<compile_context>
chip_gen: v5e
topology: v5e:2x2
jax: 0.10.0
libtpu: 0.0.40
codegen_flags: <defaults>
</compile_context>

<pallas_src>
import functools

import jax
import jax.numpy as jnp
from jax.experimental import pallas as pl
from jax.experimental.pallas import tpu as pltpu

NUM_CLASSES = 10
_ALIGN = 512            # D-axis alignment when tiling (safe for bf16 tiling)
_DEFAULT_TK_MAX = 16384  # ~4 MiB lane-padded W slab in VMEM, double-buffered 8 MiB


def _round_up(x, m):
    return ((x + m - 1) // m) * m


def _classifier_softmax_kernel(x_ref, w_ref, b_ref, o_ref):
    """K-tiled linear + softmax over the class axis.

    grid = (d_pad // tk,): step k streams a (tk, C) slab of W (class axis
    unpadded in HBM) and a (1, tk) slab of x, accumulating f32 logits directly
    in the resident output block. Bias is folded into the accumulator init;
    the softmax (exact divide) runs in a pl.when epilogue on the last step.
    """
    k = pl.program_id(0)

    @pl.when(k == 0)
    def _init():
        o_ref[...] = b_ref[...]

    o_ref[...] += jnp.dot(
        x_ref[...], w_ref[...], preferred_element_type=jnp.float32
    )

    @pl.when(k == pl.num_programs(0) - 1)
    def _epilogue():
        logits = o_ref[...]
        m = jnp.max(logits, axis=-1, keepdims=True)
        e = jnp.exp(logits - m)
        o_ref[...] = e / jnp.sum(e, axis=-1, keepdims=True)


@functools.partial(jax.jit, static_argnames=("tk_max",))
def classifier_api_forward(x_nchw, w, b, *, tk_max=_DEFAULT_TK_MAX):
    """Replicates ClassifierApi.forward: softmax(model(x), dim=1)[0]."""
    n, c, h, wd = x_nchw.shape
    d = c * h * wd
    num_classes = w.shape[1]
    assert w.shape[0] == d, (w.shape, d)

    # Choose the K tile: collapse to a single grid step when the whole padded
    # W fits comfortably in VMEM, else tile the reduction axis at tk_max.
    if d <= tk_max:
        tk = _round_up(d, _ALIGN)
        d_pad = tk
    else:
        tk = tk_max
        d_pad = _round_up(d, tk)

    # Only batch row 0 is used -> slice before compute. x stays (1, d_pad) in
    # HBM (Mosaic sublane-pads only in VMEM/vregs, no extra HBM traffic).
    x_row = x_nchw[0].reshape(1, d).astype(jnp.bfloat16)
    w_bf = w.astype(jnp.bfloat16)
    if d_pad != d:
        # NOTE: in production, pre-pad W along D once offline instead of here.
        x_row = jnp.pad(x_row, ((0, 0), (0, d_pad - d)))
        w_bf = jnp.pad(w_bf, ((0, d_pad - d), (0, 0)))
    b2 = b.reshape(1, num_classes).astype(jnp.float32)

    probs = pl.pallas_call(
        _classifier_softmax_kernel,
        out_shape=jax.ShapeDtypeStruct((1, num_classes), jnp.float32),
        grid_spec=pltpu.PrefetchScalarGridSpec(
            num_scalar_prefetch=0,
            grid=(d_pad // tk,),
            in_specs=[
                pl.BlockSpec((1, tk), lambda k: (0, k)),            # x slab
                pl.BlockSpec((tk, num_classes), lambda k: (k, 0)),  # W slab (streamed, unpadded classes)
                pl.BlockSpec((1, num_classes), lambda k: (0, 0)),   # bias (resident)
            ],
            out_specs=pl.BlockSpec((1, num_classes), lambda k: (0, 0)),
        ),
        compiler_params=pltpu.CompilerParams(
            dimension_semantics=("arbitrary",),   # K axis is a pure reduction
            vmem_limit_bytes=32 * 1024 * 1024,    # covers v5e's 16 MiB default scoped limit
        ),
    )(x_row, w_bf, b2)

    # [0] : first batch element, matching softmax(..., dim=1)[0].
    return probs[0]


def make_params(key, in_features, num_classes):
    """Deterministic synthetic 'frozen model' parameters.

    W is returned UNPADDED as (in_features, num_classes) bf16: the kernel is
    W-stream bound, so lane-padding the class axis in HBM would inflate the
    streamed bytes ~12.8x for nothing.
    """
    kw, kb = jax.random.split(key)
    w_f32 = jax.random.normal(kw, (in_features, num_classes), jnp.float32) * 0.02
    b_f32 = jax.random.normal(kb, (num_classes,), jnp.float32) * 0.01
    return w_f32.astype(jnp.bfloat16), b_f32, w_f32


if __name__ == "__main__":
    key = jax.random.PRNGKey(0)
    kx, kp = jax.random.split(key)

    # small NCHW input, PyTorch-style
    N, C, H, W = 2, 4, 16, 16
    x = jax.random.normal(kx, (N, C, H, W), jnp.float32)
    D = C * H * W                      # 1024

    w_bf16, b_f32, w_f32 = make_params(kp, D, NUM_CLASSES)

    # pure-JAX reference of the same synthetic forward pass
    # (bf16 matmul inputs, f32 accumulation + f32 softmax, matching the kernel)
    x0_bf = x[0].reshape(1, D).astype(jnp.bfloat16)
    logits_ref = jnp.dot(x0_bf, w_bf16, preferred_element_type=jnp.float32)[0] + b_f32
    y_ref = jax.nn.softmax(logits_ref)

    # single grid step (whole padded W resident in VMEM)
    y1 = jax.block_until_ready(classifier_api_forward(x, w_bf16, b_f32))
    # multi-step K-tiled accumulation path (2 grid steps)
    y2 = jax.block_until_ready(classifier_api_forward(x, w_bf16, b_f32, tk_max=512))

    for y in (y1, y2):
        assert y.shape == (NUM_CLASSES,)
        assert jnp.allclose(y, y_ref, atol=1e-5, rtol=1e-5), (y, y_ref)
        assert jnp.allclose(jnp.sum(y), 1.0, atol=1e-5)

    print("KERNEL_OK")
</pallas_src>

<mosaic_0001>
module attributes {stable_mosaic.version = 11 : i64} {
  func.func @_classifier_softmax_kernel(%arg0: i32, %arg1: memref<1x1024xbf16, #tpu.memory_space<vmem>>, %arg2: memref<1024x10xbf16, #tpu.memory_space<vmem>>, %arg3: memref<1x10xf32, #tpu.memory_space<vmem>>, %arg4: memref<1x10xf32, #tpu.memory_space<vmem>>) attributes {dimension_semantics = [#tpu.dimension_semantics<arbitrary>], iteration_bounds = array<i64: 1>, scalar_prefetch = 0 : i64, scratch_operands = 0 : i64, tpu.core_type = #tpu.core_type<tc>, window_params = [{transform_indices = @transform_0, window_bounds = array<i64: 1, 1024>}, {transform_indices = @transform_1, window_bounds = array<i64: 1024, 10>}, {pipeline_mode = #tpu.pipeline_mode<synchronous>, transform_indices = @transform_2, window_bounds = array<i64: 1, 10>}, {pipeline_mode = #tpu.pipeline_mode<synchronous>, transform_indices = @transform_3, window_bounds = array<i64: 1, 10>}]} {
    %c0_i32 = arith.constant 0 : i32
    %0 = arith.cmpi eq, %arg0, %c0_i32 : i32
    %1 = arith.extui %0 : i1 to i32
    %c0_i32_0 = arith.constant 0 : i32
    %2 = arith.cmpi ne, %1, %c0_i32_0 : i32
    scf.if %2 {
      %c0_10 = arith.constant 0 : index
      %c0_11 = arith.constant 0 : index
      %12 = vector.load %arg3[%c0_10, %c0_11] : memref<1x10xf32, #tpu.memory_space<vmem>>, vector<1x10xf32>
      %c0_12 = arith.constant 0 : index
      %c0_13 = arith.constant 0 : index
      %13 = vector.load %arg4[%c0_12, %c0_13] : memref<1x10xf32, #tpu.memory_space<vmem>>, vector<1x10xf32>
      tpu.vector_store %arg4[%c0_12, %c0_13], %12 {strides = array<i32>} : memref<1x10xf32, #tpu.memory_space<vmem>>, vector<1x10xf32>,
    } else {
    }
    %c0 = arith.constant 0 : index
    %c0_1 = arith.constant 0 : index
    %3 = vector.load %arg4[%c0, %c0_1] : memref<1x10xf32, #tpu.memory_space<vmem>>, vector<1x10xf32>
    %c0_2 = arith.constant 0 : index
    %c0_3 = arith.constant 0 : index
    %4 = vector.load %arg1[%c0_2, %c0_3] : memref<1x1024xbf16, #tpu.memory_space<vmem>>, vector<1x1024xbf16>
    %c0_4 = arith.constant 0 : index
    %c0_5 = arith.constant 0 : index
    %5 = vector.load %arg2[%c0_4, %c0_5] : memref<1024x10xbf16, #tpu.memory_space<vmem>>, vector<1024x10xbf16>
    %cst = arith.constant dense<0.000000e+00> : vector<1x10xf32>
    %6 = tpu.matmul %4, %5, %cst {dimension_numbers = #tpu.dot_dimension_numbers<[1], [0], [0], [1], [0, 0, 1, 1], [], []>} : vector<1x1024xbf16>, vector<1024x10xbf16>, vector<1x10xf32> -> vector<1x10xf32>
    %7 = arith.addf %3, %6 : vector<1x10xf32>
    %c0_6 = arith.constant 0 : index
    %c0_7 = arith.constant 0 : index
    %8 = vector.load %arg4[%c0_6, %c0_7] : memref<1x10xf32, #tpu.memory_space<vmem>>, vector<1x10xf32>
    tpu.vector_store %arg4[%c0_6, %c0_7], %7 {strides = array<i32>} : memref<1x10xf32, #tpu.memory_space<vmem>>, vector<1x10xf32>,
    %c0_i32_8 = arith.constant 0 : i32
    %9 = arith.cmpi eq, %arg0, %c0_i32_8 : i32
    %10 = arith.extui %9 : i1 to i32
    %c0_i32_9 = arith.constant 0 : i32
    %11 = arith.cmpi ne, %10, %c0_i32_9 : i32
    scf.if %11 {
      %c0_10 = arith.constant 0 : index
      %c0_11 = arith.constant 0 : index
      %12 = vector.load %arg4[%c0_10, %c0_11] : memref<1x10xf32, #tpu.memory_space<vmem>>, vector<1x10xf32>
      %cst_12 = arith.constant dense<0xFF800000> : vector<1xf32>
      %13 = vector.multi_reduction <maximumf>, %12, %cst_12 [1] : vector<1x10xf32> to vector<1xf32>
      %14 = vector.shape_cast %13 : vector<1xf32> to vector<1x1xf32>
      %15 = vector.broadcast %14 : vector<1x1xf32> to vector<1x10xf32>
      %16 = arith.subf %12, %15 : vector<1x10xf32>
      %17 = math.exp %16 : vector<1x10xf32>
      %cst_13 = arith.constant dense<0.000000e+00> : vector<1xf32>
      %18 = vector.multi_reduction <add>, %17, %cst_13 [1] : vector<1x10xf32> to vector<1xf32>
      %19 = vector.shape_cast %18 : vector<1xf32> to vector<1x1xf32>
      %20 = vector.broadcast %19 : vector<1x1xf32> to vector<1x10xf32>
      %21 = arith.divf %17, %20 : vector<1x10xf32>
      %c0_14 = arith.constant 0 : index
      %c0_15 = arith.constant 0 : index
      %22 = vector.load %arg4[%c0_14, %c0_15] : memref<1x10xf32, #tpu.memory_space<vmem>>, vector<1x10xf32>
      tpu.vector_store %arg4[%c0_14, %c0_15], %21 {strides = array<i32>} : memref<1x10xf32, #tpu.memory_space<vmem>>, vector<1x10xf32>,
    } else {
    }
    return
  }
  func.func @transform_0(%arg0: i32) -> (i32, i32) {
    %c0_i32 = arith.constant 0 : i32
    %c0_i32_0 = arith.constant 0 : i32
    return %c0_i32, %arg0 : i32, i32
  }
  func.func @transform_1(%arg0: i32) -> (i32, i32) {
    %c0_i32 = arith.constant 0 : i32
    %c0_i32_0 = arith.constant 0 : i32
    return %arg0, %c0_i32 : i32, i32
  }
  func.func @transform_2(%arg0: i32) -> (i32, i32) {
    %c0_i32 = arith.constant 0 : i32
    %c0_i32_0 = arith.constant 0 : i32
    %c0_i32_1 = arith.constant 0 : i32
    return %c0_i32, %c0_i32_0 : i32, i32
  }
  func.func @transform_3(%arg0: i32) -> (i32, i32) {
    %c0_i32 = arith.constant 0 : i32
    %c0_i32_0 = arith.constant 0 : i32
    %c0_i32_1 = arith.constant 0 : i32
    return %c0_i32, %c0_i32_0 : i32, i32
  }
}

</mosaic_0001>

<bundles_post_ra>
// kernel: classifier_api_forward.1
= control target key start
LH: loop header
LB: loop body
LE: loop exit
PB: predicated region body
PF: predicated region fallthrough
CT: control target
= control target key end

     0   :  { %s1284_s0 = inlined_call_operand.vmem [shape: bf16[1,1024], index: 0, kind: input, shape index: {}]   ;;  %s1285_s1 = inlined_call_operand.vmem [shape: bf16[1024,10], index: 1, kind: input, shape index: {}]   ;;  %s1286_s2 = inlined_call_operand.vmem [shape: f32[1,10], index: 2, kind: input, shape index: {}]   ;;  %s1287_s3 = inlined_call_operand.hbm [shape: f32[1,10], index: 3, kind: output, shape index: {}]  }
   0x1   :  { %v969_v0 = vld [vmem:[%s1285_s1 + $0x38] sm:$0xff]  ;;  %v968_v4 = vld [vmem:[%s1285_s1 + $0x30] sm:$0xff]  ;;  %v967_v8 = vld [vmem:[%s1285_s1 + $0x28] sm:$0xff] }
   0x2   :  { %v977_v1 = vld [vmem:[%s1285_s1 + $0x78] sm:$0xff]  ;;  %554 = vmatpush.bf16.msra.mxu0 %v969_v0  ;;  %v976_v5 = vld [vmem:[%s1285_s1 + $0x70] sm:$0xff]  ;;  %v975_v9 = vld [vmem:[%s1285_s1 + $0x68] sm:$0xff] }
   0x3   :  { %v985_v2 = vld [vmem:[%s1285_s1 + $0xb8] sm:$0xff]  ;;  %567 = vmatpush.bf16.msra.mxu1 %v977_v1  ;;  %v984_v6 = vld [vmem:[%s1285_s1 + $0xb0] sm:$0xff]  ;;  %v983_v10 = vld [vmem:[%s1285_s1 + $0xa8] sm:$0xff] }
   0x4   :  { %v993_v3 = vld [vmem:[%s1285_s1 + $0xf8] sm:$0xff]  ;;  %580 = vmatpush.bf16.msra.mxu2 %v985_v2  ;;  %v992_v7 = vld [vmem:[%s1285_s1 + $0xf0] sm:$0xff]  ;;  %v991_v11 = vld [vmem:[%s1285_s1 + $0xe8] sm:$0xff] }
   0x5   :  { %593 = vmatpush.bf16.msra.mxu3 %v993_v3  ;;  %v966_v12 = vld [vmem:[%s1285_s1 + $0x20] sm:$0xff]  ;;  %v965_v17 = vld [vmem:[%s1285_s1 + $0x18] sm:$0xff]  ;;  %v964_v21 = vld [vmem:[%s1285_s1 + $0x10] sm:$0xff] }
   0x6   :  { %555 = vmatpush.bf16.msra.mxu0 %v968_v4  ;;  %v974_v13 = vld [vmem:[%s1285_s1 + $0x60] sm:$0xff]  ;;  %v973_v18 = vld [vmem:[%s1285_s1 + $0x58] sm:$0xff]  ;;  %v972_v22 = vld [vmem:[%s1285_s1 + $0x50] sm:$0xff] }
   0x7   :  { %568 = vmatpush.bf16.msra.mxu1 %v976_v5  ;;  %v982_v14 = vld [vmem:[%s1285_s1 + $0xa0] sm:$0xff]  ;;  %v981_v19 = vld [vmem:[%s1285_s1 + $0x98] sm:$0xff] }
   0x8   :  { %581 = vmatpush.bf16.msra.mxu2 %v984_v6  ;;  %v990_v15 = vld [vmem:[%s1285_s1 + $0xe0] sm:$0xff]  ;;  %v989_v20 = vld [vmem:[%s1285_s1 + $0xd8] sm:$0xff] }
   0x9   :  { %594 = vmatpush.bf16.msra.mxu3 %v992_v7  ;;  %v23_v16 = vld [vmem:[%s1284_s0] sm:$0xff] }
   0xa   :  { %556 = vmatpush.bf16.msra.mxu0 %v967_v8  ;;  %153 = vst [vmem:[#allocation1] ss:$9 sm:$0xff] %v23_v16 }
   0xb   :  { %569 = vmatpush.bf16.msra.mxu1 %v975_v9 }
   0xc   :  { %582 = vmatpush.bf16.msra.mxu2 %v983_v10 }
   0xd   :  { %595 = vmatpush.bf16.msra.mxu3 %v991_v11 }
   0xe   :  { %557 = vmatpush.bf16.msra.mxu0 %v966_v12 }
   0xf   :  { %570 = vmatpush.bf16.msra.mxu1 %v974_v13 }
  0x10   :  { %583 = vmatpush.bf16.msra.mxu2 %v982_v14 }
  0x11   :  { %596 = vmatpush.bf16.msra.mxu3 %v990_v15 }
  0x12   :  { %558 = vmatpush.bf16.msra.mxu0 %v965_v17 }
  0x13   :  { %571 = vmatpush.bf16.msra.mxu1 %v973_v18 }
  0x14   :  { %8 = vsyncpa [#allocation3], 0  ;;  %584 = vmatpush.bf16.msra.mxu2 %v981_v19  ;;  %v980_v23 = vld [vmem:[%s1285_s1 + $0x90] sm:$0xff]  ;;  %v963_v25 = vld [vmem:[%s1285_s1 + $0x8] sm:$0xff]  ;;  %vm20_vm0 = vcmask 73728   ;;  %s697_s7 = sshll.u32 %s1287_s3, 4  ;;  %s698_s7 = int_to_ptr.hbm [resolvable:$true] %s697_s7 }
  0x15   :  { %597 = vmatpush.bf16.msra.mxu3 %v989_v20  ;;  %v988_v24 = vld [vmem:[%s1285_s1 + $0xd0] sm:$0xff]  ;;  %v971_v26 = vld [vmem:[%s1285_s1 + $0x48] sm:$0xff]  ;;  %v962_v29 = vld [vmem:[%s1285_s1] sm:$0xff] }
  0x16   :  { %559 = vmatpush.bf16.msra.mxu0 %v964_v21  ;;  %v979_v27 = vld [vmem:[%s1285_s1 + $0x88] sm:$0xff]  ;;  %v970_v30 = vld [vmem:[%s1285_s1 + $0x40] sm:$0xff]  ;;  %v1001_v33 = vld [vmem:[%s1285_s1 + $0x138] sm:$0xff] }
  0x17   :  { %572 = vmatpush.bf16.msra.mxu1 %v972_v22  ;;  %v987_v28 = vld [vmem:[%s1285_s1 + $0xc8] sm:$0xff]  ;;  %v978_v31 = vld [vmem:[%s1285_s1 + $0x80] sm:$0xff]  ;;  %v1009_v34 = vld [vmem:[%s1285_s1 + $0x178] sm:$0xff] }
  0x18   :  { %585 = vmatpush.bf16.msra.mxu2 %v980_v23  ;;  %v986_v32 = vld [vmem:[%s1285_s1 + $0xc0] sm:$0xff]  ;;  %v1017_v35 = vld [vmem:[%s1285_s1 + $0x1b8] sm:$0xff]  ;;  %v1000_v37 = vld [vmem:[%s1285_s1 + $0x130] sm:$0xff] }
  0x19   :  { %598 = vmatpush.bf16.msra.mxu3 %v988_v24  ;;  %v1025_v36 = vld [vmem:[%s1285_s1 + $0x1f8] sm:$0xff]  ;;  %v154_v39 = vld [vmem:[#allocation1] sm:$0xff]  ;;  %v1008_v40 = vld [vmem:[%s1285_s1 + $0x170] sm:$0xff] }
  0x1a   :  { %560 = vmatpush.bf16.msra.mxu0 %v963_v25  ;;  %v156_v38 = vld [vmem:[#allocation1 + $0x12] sm:$0xff]  ;;  %v157_v41 = vld [vmem:[#allocation1 + $0x1b] sm:$0xff]  ;;  %v155_v42 = vld [vmem:[#allocation1 + $0x9] sm:$0xff] }
  0x1b   :  { %573 = vmatpush.bf16.msra.mxu1 %v971_v26  ;;  %v1016_v43 = vld [vmem:[%s1285_s1 + $0x1b0] sm:$0xff]  ;;  %v999_v45 = vld [vmem:[%s1285_s1 + $0x128] sm:$0xff]  ;;  %v998_v49 = vld [vmem:[%s1285_s1 + $0x120] sm:$0xff] }
  0x1c   :  { %586 = vmatpush.bf16.msra.mxu2 %v979_v27  ;;  %v1024_v44 = vld [vmem:[%s1285_s1 + $0x1f0] sm:$0xff]  ;;  %v1007_v46 = vld [vmem:[%s1285_s1 + $0x168] sm:$0xff]  ;;  %v1006_v50 = vld [vmem:[%s1285_s1 + $0x160] sm:$0xff] }
  0x1d   :  { %599 = vmatpush.bf16.msra.mxu3 %v987_v28  ;;  %v1015_v47 = vld [vmem:[%s1285_s1 + $0x1a8] sm:$0xff]  ;;  %v1014_v51 = vld [vmem:[%s1285_s1 + $0x1a0] sm:$0xff]  ;;  %v997_v53 = vld [vmem:[%s1285_s1 + $0x118] sm:$0xff] }
  0x1e   :  { %561 = vmatpush.bf16.msra.mxu0 %v962_v29  ;;  %v1023_v48 = vld [vmem:[%s1285_s1 + $0x1e8] sm:$0xff]  ;;  %v1022_v52 = vld [vmem:[%s1285_s1 + $0x1e0] sm:$0xff]  ;;  %v1005_v54 = vld [vmem:[%s1285_s1 + $0x158] sm:$0xff] }
  0x1f   :  { %574 = vmatpush.bf16.msra.mxu1 %v970_v30  ;;  %v1013_v55 = vld [vmem:[%s1285_s1 + $0x198] sm:$0xff]  ;;  %v996_v57 = vld [vmem:[%s1285_s1 + $0x110] sm:$0xff]  ;;  %v995_v61 = vld [vmem:[%s1285_s1 + $0x108] sm:$0xff] }
  0x20   :  { %587 = vmatpush.bf16.msra.mxu2 %v978_v31  ;;  %v1021_v56 = vld [vmem:[%s1285_s1 + $0x1d8] sm:$0xff]  ;;  %v1004_v58 = vld [vmem:[%s1285_s1 + $0x150] sm:$0xff]  ;;  %v1003_v62 = vld [vmem:[%s1285_s1 + $0x148] sm:$0xff] }
  0x21   :  { %600 = vmatpush.bf16.msra.mxu3 %v986_v32  ;;  %562 = vmatmul.bf16.vlgmr.msra.gmra.mxu0 %v154_v39  ;;  %v1012_v59 = vld [vmem:[%s1285_s1 + $0x190] sm:$0xff]  ;;  %v1011_v63 = vld [vmem:[%s1285_s1 + $0x188] sm:$0xff]  ;;  %v994_v1 = vld [vmem:[%s1285_s1 + $0x100] sm:$0xff] }
  0x22   :  { %606 = vmatpush.bf16.msrb.mxu0 %v1001_v33  ;;  %575 = vmatmul.bf16.vlgmr.msra.gmra.mxu1 %v155_v42  ;;  %v1020_v60 = vld [vmem:[%s1285_s1 + $0x1d0] sm:$0xff]  ;;  %v1019_v0 = vld [vmem:[%s1285_s1 + $0x1c8] sm:$0xff]  ;;  %v1002_v2 = vld [vmem:[%s1285_s1 + $0x140] sm:$0xff] }
  0x23   :  { %619 = vmatpush.bf16.msrb.mxu1 %v1009_v34  ;;  %588 = vmatmul.bf16.vlgmr.msra.gmra.mxu2 %v156_v38  ;;  %v1010_v3 = vld [vmem:[%s1285_s1 + $0x180] sm:$0xff]  ;;  %v159_v6 = vld [vmem:[#allocation1 + $0x2d] sm:$0xff]  ;;  %v160_v7 = vld [vmem:[#allocation1 + $0x36] sm:$0xff] }
  0x24   :  { %632 = vmatpush.bf16.msrb.mxu2 %v1017_v35  ;;  %601 = vmatmul.bf16.vlgmr.msra.gmra.mxu3 %v157_v41  ;;  %v1018_v4 = vld [vmem:[%s1285_s1 + $0x1c0] sm:$0xff]  ;;  %s1057_s1 = smov [#allocation2]  }
  0x25   :  { %645 = vmatpush.bf16.msrb.mxu3 %v1025_v36  ;;  %v158_v5 = vld [vmem:[#allocation1 + $0x24] sm:$0xff]  ;;  %v19_v10 = vld [vmem:[%s1286_s2] sm:$0x1]  ;;  %s695_s2 = sshll.u32 %s1057_s1, 4  ;;  %s696_s2 = int_to_ptr.vmem [resolvable:$true] %s695_s2 }
  0x26   :  { %607 = vmatpush.bf16.msrb.mxu0 %v1000_v37  ;;  %v161_v8 = vld [vmem:[#allocation1 + $0x3f] sm:$0xff]  ;;  %21 = vst.msk [vmem:[#allocation2] sm:$0x1] %vm20_vm0, %v19_v10 }
  0x27   :  { %620 = vmatpush.bf16.msrb.mxu1 %v1008_v40 }
  0x28   :  { %633 = vmatpush.bf16.msrb.mxu2 %v1016_v43 }
  0x29   :  { %646 = vmatpush.bf16.msrb.mxu3 %v1024_v44 }
  0x2a   :  { %608 = vmatpush.bf16.msrb.mxu0 %v999_v45 }
  0x2b   :  { %621 = vmatpush.bf16.msrb.mxu1 %v1007_v46 }
  0x2c   :  { %634 = vmatpush.bf16.msrb.mxu2 %v1015_v47 }
  0x2d   :  { %647 = vmatpush.bf16.msrb.mxu3 %v1023_v48  ;;  %v22_v30 = vld [vmem:[#allocation2] sm:$0x1] }
  0x2e   :  { %609 = vmatpush.bf16.msrb.mxu0 %v998_v49 }
  0x2f   :  { %622 = vmatpush.bf16.msrb.mxu1 %v1006_v50 }
  0x30   :  { %635 = vmatpush.bf16.msrb.mxu2 %v1014_v51 }
  0x31   :  { %648 = vmatpush.bf16.msrb.mxu3 %v1022_v52 }
  0x32   :  { %610 = vmatpush.bf16.msrb.mxu0 %v997_v53 }
  0x33   :  { %623 = vmatpush.bf16.msrb.mxu1 %v1005_v54 }
  0x34   :  { %636 = vmatpush.bf16.msrb.mxu2 %v1013_v55 }
  0x35   :  { %649 = vmatpush.bf16.msrb.mxu3 %v1021_v56 }
  0x36   :  { %611 = vmatpush.bf16.msrb.mxu0 %v996_v57 }
  0x37   :  { %624 = vmatpush.bf16.msrb.mxu1 %v1004_v58 }
  0x38   :  { %637 = vmatpush.bf16.msrb.mxu2 %v1012_v59 }
  0x39   :  { %650 = vmatpush.bf16.msrb.mxu3 %v1020_v60 }
  0x3a   :  { %612 = vmatpush.bf16.msrb.mxu0 %v995_v61 }
  0x3b   :  { %625 = vmatpush.bf16.msrb.mxu1 %v1003_v62 }
  0x3c   :  { %638 = vmatpush.bf16.msrb.mxu2 %v1011_v63 }
  0x3d   :  { %651 = vmatpush.bf16.msrb.mxu3 %v1019_v0 }
  0x3e   :  { %613 = vmatpush.bf16.msrb.mxu0 %v994_v1 }
  0x3f   :  { %626 = vmatpush.bf16.msrb.mxu1 %v1002_v2 }
  0x40   :  { %639 = vmatpush.bf16.msrb.mxu2 %v1010_v3 }
  0x41   :  { %652 = vmatpush.bf16.msrb.mxu3 %v1018_v4  ;;  %614 = vmatmul.bf16.vlgmr.msrb.gmra.mxu0 %v158_v5 }
  0x42   :  { %627 = vmatmul.bf16.vlgmr.msrb.gmra.mxu1 %v159_v6 }
  0x43   :  { %640 = vmatmul.bf16.vlgmr.msrb.gmra.mxu2 %v160_v7 }
  0x44   :  { %653 = vmatmul.bf16.vlgmr.msrb.gmra.mxu3 %v161_v8 }
  0x9e   :  { %v563_v9 = vpop.f32.mrf.mxu0 }
  0x9f   :  { %v576_v11 = vpop.f32.mrf.mxu1 }
  0xa0   :  { %v577_v18 = vadd.f32 %v576_v11, %v563_v9 }
  0xa6   :  { %v589_v12 = vpop.f32.mrf.mxu2  ;;  %v565_v14 = vpop.f32.mrf.mxu0 }
  0xa7   :  { %v602_v13 = vpop.f32.mrf.mxu3  ;;  %v578_v15 = vpop.f32.mrf.mxu1  ;;  %v590_v19 = vadd.f32 %v589_v12, %v577_v18 }
  0xa9   :  { %v603_v20 = vadd.f32 %v602_v13, %v590_v19 }
  0xae   :  { %v591_v16 = vpop.f32.mrf.mxu2 }
  0xaf   :  { %v604_v17 = vpop.f32.mrf.mxu3 }
  0xbe   :  { %v615_v21 = vpop.f32.mrf.mxu0 }
  0xbf   :  { %v628_v22 = vpop.f32.mrf.mxu1  ;;  %v616_v23 = vadd.f32 %v615_v21, %v603_v20 }
  0xc1   :  { %v629_v24 = vadd.f32 %v628_v22, %v616_v23 }
  0xc6   :  { %v641_v25 = vpop.f32.mrf.mxu2  ;;  %v617_v28 = vpop.f32.mrf.mxu0 }
  0xc7   :  { %v654_v26 = vpop.f32.mrf.mxu3  ;;  %v642_v27 = vadd.f32 %v641_v25, %v629_v24  ;;  %v630_v29 = vpop.f32.mrf.mxu1 }
  0xc9   :  { %v655_v31 = vadd.f32 %v654_v26, %v642_v27 }
  0xcb   :  { %v658_v32 = vadd.f32 %v655_v31, %v22_v30 }
  0xcd   :  { %660 = vst.msk [vmem:[#allocation2] sm:$0x1] %vm20_vm0, %v658_v32 }
  0xce   :  { %v643_v33 = vpop.f32.mrf.mxu2 }
  0xcf   :  { %v656_v34 = vpop.f32.mrf.mxu3 }
  0xd4   :  { %v664_v35 = vld [vmem:[#allocation2] sm:$0x1] }
  0xd5   :  { %v665_v36 = vsel %vm20_vm0, %v664_v35, -inf }
  0xd6   :  { %666 = vmax.xlane.f32.xlu0 %v665_v36 }
 0x149   :  { %v667_v37 = vpop.xlane.xlu0 %666 }
 0x14a   :  { %v668_v38 = vsub.f32 %v664_v35, %v667_v37 }
 0x14c   :  { %v669_v39 = vmul.f32 1.442695, %v668_v38 }
 0x14e   :  { %1027 = vpow2.f32 %v669_v39 }
 0x154   :  { %v1028_v40 = vpop.eup %1027 }
 0x155   :  { %v671_v41 = vsel %vm20_vm0, %v1028_v40, 0.0 }
 0x156   :  { %672 = vadd.xlane.f32.xlu0 %v671_v41 }
 0x1c9   :  { %v673_v42 = vpop.xlane.xlu0 %672 }
 0x1ca   :  { %1029 = vrcp.f32 %v673_v42  ;;  %v685_v46 = vand.u32 2147483648, %v673_v42  ;;  %v683_v48 = vand.u32 2147483647, %v673_v42  ;;  %vm679_vm2 = vweird.f32 %v673_v42 }
 0x1cc   :  { %v686_v50 = vor.u32 1.1754944e-38, %v685_v46  ;;  %vm684_vm4 = vcmp.eq.f32.partialorder %v683_v48, 8.507059e+37 }
 0x1d0   :  { %v1030_v43 = vpop.eup %1029 }
 0x1d1   :  { %v675_v44 = vmul.f32 %v1030_v43, %v673_v42  ;;  %vm680_vm1 = vweird.f32 %v1030_v43 }
 0x1d2   :  { %vm681_vm3 = vmor %vm679_vm2, %vm680_vm1 }
 0x1d3   :  { %v676_v45 = vsub.f32 1.0, %v675_v44 }
 0x1d5   :  { %v677_v47 = vmul.f32 %v1030_v43, %v676_v45 }
 0x1d7   :  { %v678_v49 = vadd.f32 %v1030_v43, %v677_v47 }
 0x1d9   :  { %v682_v51 = vsel %vm681_vm3, %v1030_v43, %v678_v49 }
 0x1da   :  { %v687_v52 = vsel %vm684_vm4, %v686_v50, %v682_v51 }
 0x1db   :  { %v688_v53 = vmul.f32 %v1028_v40, %v687_v52 }
 0x1dd   :  { %689 = vst.msk [vmem:[#allocation2] sm:$0x1] %vm20_vm0, %v688_v53 }
 0x1de   :  { %700 = dma.vmem_to_hbm [thread:$0]  %s696_s2, 16, %s698_s7, [#allocation3]  }
 0x1df   :  { %1055 = dma.done.wait [#allocation3], 16  }
 0x1e0   :  { %1056 = vsyncadd [#allocation3], 4294967280 }
 0x1e1   :  { %705 = vsyncpa [#allocation3], 1 }

</bundles_post_ra>
